<compile_context>
chip_gen: v7x
topology: tpu7x:2x2x1
jax: 0.10.0
libtpu: 0.0.40
codegen_flags: <defaults>
</compile_context>

<pallas_src>
import jax
import jax.numpy as jnp
from jax import lax
from jax.experimental import pallas as pl
from jax.experimental.pallas import tpu as pltpu

# ---------------- model sizes (consistent with the module) ------------------
N_USERS = 16
N_MOVIES = 24
N_GENRES = 8
E = 32            # embedding_size
H1, H2 = 64, 32   # hidden_size = [64, 32]
BN_EPS = 1e-5

# ---------------- packed constant slab layout: (128, 128) f32 ---------------
R_L1 = 0                       # rows [0, H1)
C_W1U = 0                      #   cols [0, 16)   : W1U  (H1, N_USERS)
C_W1M = N_USERS                #   cols [16, 40)  : W1M  (H1, N_MOVIES)
C_W1G = N_USERS + N_MOVIES     #   cols [40, 48)  : W1G  (H1, N_GENRES)
C_B1 = C_W1G + N_GENRES        #   col  48        : b1'  column
R_W2 = 64                      # rows [64, 96)
C_B2 = H1                      #   cols [0,64): W2', col 64: b2' column
R_GT = 96                      # rows [96, 120), cols [0,16): G^T (N_MOVIES, N_USERS)
R_WMLP = 120                   # row 120, cols [0, H2): fused w_mlp row
R_BOUT = 121                   # row 121, col 0: fused output bias
SLAB_ROWS = 128


def hybrid_kernel(ids_ref, genres_ref, slab_ref, out_ref):
    f32 = jnp.float32
    n = genres_ref.shape[1]                     # batch (on lanes)
    inv_n = 1.0 / n
    ones_col = jnp.ones((n, 1), f32)            # batch-axis reducer (MXU)

    # --- one-hot id rows, (features, batch) layout -------------------------
    uid = ids_ref[0:1, :]                       # (1, n) int32
    mid = ids_ref[1:2, :]
    u_oh = (lax.broadcasted_iota(jnp.int32, (N_USERS, n), 0) == uid).astype(f32)
    m_oh = (lax.broadcasted_iota(jnp.int32, (N_MOVIES, n), 0) == mid).astype(f32)

    # --- MLP layer 1: gathers + genre linear pre-folded into the weights ---
    h1 = (jnp.dot(slab_ref[R_L1:R_L1 + H1, C_W1U:C_W1U + N_USERS], u_oh,
                  preferred_element_type=f32)
          + jnp.dot(slab_ref[R_L1:R_L1 + H1, C_W1M:C_W1M + N_MOVIES], m_oh,
                    preferred_element_type=f32)
          + jnp.dot(slab_ref[R_L1:R_L1 + H1, C_W1G:C_W1G + N_GENRES],
                    genres_ref[...], preferred_element_type=f32)
          + slab_ref[R_L1:R_L1 + H1, C_B1:C_B1 + 1])              # (H1, n)
    h1 = jnp.maximum(h1, 0.0)

    # BN1 (training mode): batch sums via MXU, two-pass variance.
    mean1 = jnp.dot(h1, ones_col, preferred_element_type=f32) * inv_n
    c1 = h1 - mean1
    var1 = jnp.dot(c1 * c1, ones_col, preferred_element_type=f32) * inv_n
    h1 = c1 * lax.rsqrt(var1 + BN_EPS)          # gamma1/beta1 folded into W2/b2

    # --- MLP layer 2 --------------------------------------------------------
    h2 = (jnp.dot(slab_ref[R_W2:R_W2 + H2, 0:H1], h1, preferred_element_type=f32)
          + slab_ref[R_W2:R_W2 + H2, C_B2:C_B2 + 1])              # (H2, n)
    h2 = jnp.maximum(h2, 0.0)

    mean2 = jnp.dot(h2, ones_col, preferred_element_type=f32) * inv_n
    c2 = h2 - mean2
    var2 = jnp.dot(c2 * c2, ones_col, preferred_element_type=f32) * inv_n
    h2 = c2 * lax.rsqrt(var2 + BN_EPS)          # gamma2/beta2 folded into w_mlp/b_out

    # --- MF path: mf[b] = G[uid_b, mid_b],  G = w_mf * (U_mf @ M_mf^T) ------
    gt = slab_ref[R_GT:R_GT + N_MOVIES, 0:N_USERS]                # (24, 16)
    mf_blk = jnp.dot(gt, u_oh, preferred_element_type=f32) * m_oh  # (24, n)

    # --- fused output, lane-dense (1, n) store ------------------------------
    out_ref[...] = (jnp.dot(jnp.ones((1, N_MOVIES), f32), mf_blk,
                            preferred_element_type=f32)
                    + jnp.dot(slab_ref[R_WMLP:R_WMLP + 1, 0:H2], h2,
                              preferred_element_type=f32)
                    + slab_ref[R_BOUT:R_BOUT + 1, 0:1])


def pack_inputs(params, user_ids, movie_ids, genres):
    """Pack the 19 model tensors + ids into 3 kernel operands (all trace-level)."""
    f = jnp.float32
    ids = jnp.stack([user_ids.astype(jnp.int32), movie_ids.astype(jnp.int32)],
                    axis=0)                                        # (2, B)
    genres_t = genres.astype(f).T                                  # (G, B)

    # --- one-time weight fusion (negligible XLA-level cost) -----------------
    W1U = (params["user_emb_mlp"] @ params["w1u"]).T               # (H1, N_USERS)
    W1M = (params["movie_emb_mlp"] @ params["w1m"]).T              # (H1, N_MOVIES)
    W1G = (params["wg"] @ params["w1g"]).T                         # (H1, N_GENRES)
    b1f = params["b1"] + params["bg"] @ params["w1g"]              # (1, H1)
    W2F = params["w2"].T * params["g1"]                            # (H2, H1)
    b2f = params["b2"] + params["be1"] @ params["w2"]              # (1, H2)
    GT = params["w_mf"][0, 0] * (params["movie_emb_mf"]
                                 @ params["user_emb_mf"].T)        # (N_MOVIES, N_USERS)
    wmlpf = params["w_mlp"][:, 0] * params["g2"][0]                # (H2,)
    boutf = params["b_out"][0, 0] + params["be2"][0] @ params["w_mlp"][:, 0]

    slab = jnp.zeros((SLAB_ROWS, 128), f)
    slab = slab.at[R_L1:R_L1 + H1, C_W1U:C_W1U + N_USERS].set(W1U)
    slab = slab.at[R_L1:R_L1 + H1, C_W1M:C_W1M + N_MOVIES].set(W1M)
    slab = slab.at[R_L1:R_L1 + H1, C_W1G:C_W1G + N_GENRES].set(W1G)
    slab = slab.at[R_L1:R_L1 + H1, C_B1].set(b1f[0])
    slab = slab.at[R_W2:R_W2 + H2, 0:H1].set(W2F)
    slab = slab.at[R_W2:R_W2 + H2, C_B2].set(b2f[0])
    slab = slab.at[R_GT:R_GT + N_MOVIES, 0:N_USERS].set(GT)
    slab = slab.at[R_WMLP, 0:H2].set(wmlpf)
    slab = slab.at[R_BOUT, 0].set(boutf)
    return ids, genres_t, slab


def hybrid_recsys_forward(params, user_ids, movie_ids, genres):
    n = genres.shape[0]
    # Batch must NOT be padded with dummy rows (BN statistics couple the batch).
    # Lane-dense stores want n % 128 == 0; n % 8 keeps layouts tidy otherwise.
    assert n % 8 == 0, "batch must be a multiple of 8"
    ids, genres_t, slab = pack_inputs(params, user_ids, movie_ids, genres)

    vmem = pl.BlockSpec(memory_space=pltpu.MemorySpace.VMEM)

    flops = 2 * n * (H1 * (N_USERS + N_MOVIES + N_GENRES)   # layer 1
                     + H2 * H1                               # layer 2
                     + 2 * H1 + 2 * H2                       # BN reductions
                     + N_MOVIES * N_USERS + N_MOVIES + H2)   # MF + output
    bytes_accessed = (ids.size * 4 + genres_t.size * 4 + slab.size * 4 + n * 4)

    out = pl.pallas_call(
        hybrid_kernel,
        out_shape=jax.ShapeDtypeStruct((1, n), jnp.float32),       # lane-dense
        in_specs=[vmem, vmem, vmem],
        out_specs=vmem,
        compiler_params=pltpu.CompilerParams(vmem_limit_bytes=4 * 1024 * 1024),
        cost_estimate=pl.CostEstimate(flops=flops, transcendentals=H1 + H2,
                                      bytes_accessed=bytes_accessed),
    )(ids, genres_t, slab)
    return out[0]                                                  # (B,)


def make_params(key):
    ks = jax.random.split(key, 20)
    f = jnp.float32
    return {
        "user_emb_mf":   jax.random.normal(ks[0], (N_USERS, E), f),
        "movie_emb_mf":  jax.random.normal(ks[1], (N_MOVIES, E), f),
        "user_emb_mlp":  jax.random.normal(ks[2], (N_USERS, E), f),
        "movie_emb_mlp": jax.random.normal(ks[3], (N_MOVIES, E), f),
        # genre_embedding: Linear(n_genres -> E); stored as [in, out]
        "wg": jax.random.normal(ks[4], (N_GENRES, E), f) * 0.1,
        "bg": jax.random.normal(ks[5], (1, E), f) * 0.1,
        # MLP linear 1: Linear(3E -> H1), weight split into 3 [E, H1] blocks
        "w1u": jax.random.normal(ks[6], (E, H1), f) * 0.1,
        "w1m": jax.random.normal(ks[7], (E, H1), f) * 0.1,
        "w1g": jax.random.normal(ks[8], (E, H1), f) * 0.1,
        "b1": jax.random.normal(ks[9], (1, H1), f) * 0.1,
        "g1": 1.0 + 0.1 * jax.random.normal(ks[15], (1, H1), f),
        "be1": 0.1 * jax.random.normal(ks[16], (1, H1), f),
        # MLP linear 2: Linear(H1 -> H2)
        "w2": jax.random.normal(ks[10], (H1, H2), f) * 0.1,
        "b2": jax.random.normal(ks[11], (1, H2), f) * 0.1,
        "g2": 1.0 + 0.1 * jax.random.normal(ks[17], (1, H2), f),
        "be2": 0.1 * jax.random.normal(ks[18], (1, H2), f),
        # output layer: Linear(H2 + 1 -> 1), split into mf scalar + mlp block
        "w_mf": jax.random.normal(ks[12], (1, 1), f) * 0.1,
        "w_mlp": jax.random.normal(ks[13], (H2, 1), f) * 0.1,
        "b_out": jax.random.normal(ks[14], (1, 1), f) * 0.1,
    }


def reference_forward(params, user_ids, movie_ids, genres):
    # Pure-JAX reference mirroring the PyTorch forward (training-mode BN).
    ue_mf = params["user_emb_mf"][user_ids]
    me_mf = params["movie_emb_mf"][movie_ids]
    mf = jnp.sum(ue_mf * me_mf, axis=1, keepdims=True)
    ue = params["user_emb_mlp"][user_ids]
    me = params["movie_emb_mlp"][movie_ids]
    ge = genres @ params["wg"] + params["bg"]
    h1 = ue @ params["w1u"] + me @ params["w1m"] + ge @ params["w1g"] + params["b1"]
    h1 = jnp.maximum(h1, 0.0)
    m1, v1 = jnp.mean(h1, 0, keepdims=True), jnp.var(h1, 0, keepdims=True)
    h1 = (h1 - m1) / jnp.sqrt(v1 + BN_EPS) * params["g1"] + params["be1"]
    h2 = h1 @ params["w2"] + params["b2"]
    h2 = jnp.maximum(h2, 0.0)
    m2, v2 = jnp.mean(h2, 0, keepdims=True), jnp.var(h2, 0, keepdims=True)
    h2 = (h2 - m2) / jnp.sqrt(v2 + BN_EPS) * params["g2"] + params["be2"]
    out = mf * params["w_mf"] + h2 @ params["w_mlp"] + params["b_out"]
    return out[:, 0]


if __name__ == "__main__":
    B = 128  # multiple of 128 -> batch fully lane-dense in the kernel
    key = jax.random.PRNGKey(0)
    kp, ku, km, kg = jax.random.split(key, 4)
    params = make_params(kp)

    user_ids = jax.random.randint(ku, (B,), 0, N_USERS, dtype=jnp.int32)
    movie_ids = jax.random.randint(km, (B,), 0, N_MOVIES, dtype=jnp.int32)
    genres = jax.random.bernoulli(kg, 0.3, (B, N_GENRES)).astype(jnp.float32)

    out = hybrid_recsys_forward(params, user_ids, movie_ids, genres)
    out = jax.block_until_ready(out)

    ref = reference_forward(params, user_ids, movie_ids, genres)
    assert out.shape == (B,)
    assert jnp.allclose(out, ref, atol=1e-4, rtol=1e-4), (out, ref)

    print("KERNEL_OK")
</pallas_src>

<mosaic_0001>
module attributes {stable_mosaic.version = 11 : i64} {
  func.func @hybrid_kernel(%arg0: memref<2x128xi32, #tpu.memory_space<vmem>>, %arg1: memref<8x128xf32, #tpu.memory_space<vmem>>, %arg2: memref<128x128xf32, #tpu.memory_space<vmem>>, %arg3: memref<1x128xf32, #tpu.memory_space<vmem>>) attributes {dimension_semantics = [], scalar_prefetch = 0 : i64, scratch_operands = 0 : i64, tpu.core_type = #tpu.core_type<tc>} {
    %cst = arith.constant 1.000000e+00 : f32
    %0 = vector.broadcast %cst : f32 to vector<128x1xf32>
    %c0 = arith.constant 0 : index
    %c0_0 = arith.constant 0 : index
    %1 = vector.load %arg0[%c0, %c0_0] : memref<2x128xi32, #tpu.memory_space<vmem>>, vector<1x128xi32>
    %c1 = arith.constant 1 : index
    %c0_1 = arith.constant 0 : index
    %2 = vector.load %arg0[%c1, %c0_1] : memref<2x128xi32, #tpu.memory_space<vmem>>, vector<1x128xi32>
    %3 = tpu.iota {dimensions = array<i32: 0>} : vector<16x128xi32>
    %4 = vector.broadcast %1 : vector<1x128xi32> to vector<16x128xi32>
    %5 = arith.cmpi eq, %3, %4 : vector<16x128xi32>
    %6 = arith.extui %5 : vector<16x128xi1> to vector<16x128xi32>
    %7 = arith.sitofp %6 : vector<16x128xi32> to vector<16x128xf32>
    %8 = tpu.iota {dimensions = array<i32: 0>} : vector<24x128xi32>
    %9 = vector.broadcast %2 : vector<1x128xi32> to vector<24x128xi32>
    %10 = arith.cmpi eq, %8, %9 : vector<24x128xi32>
    %11 = arith.extui %10 : vector<24x128xi1> to vector<24x128xi32>
    %12 = arith.sitofp %11 : vector<24x128xi32> to vector<24x128xf32>
    %c0_2 = arith.constant 0 : index
    %c0_3 = arith.constant 0 : index
    %13 = vector.load %arg2[%c0_2, %c0_3] : memref<128x128xf32, #tpu.memory_space<vmem>>, vector<64x16xf32>
    %cst_4 = arith.constant dense<0.000000e+00> : vector<64x128xf32>
    %14 = tpu.matmul %13, %7, %cst_4 {dimension_numbers = #tpu.dot_dimension_numbers<[1], [0], [0], [1], [0, 0, 1, 1], [], []>} : vector<64x16xf32>, vector<16x128xf32>, vector<64x128xf32> -> vector<64x128xf32>
    %c0_5 = arith.constant 0 : index
    %c16 = arith.constant 16 : index
    %15 = vector.load %arg2[%c0_5, %c16] : memref<128x128xf32, #tpu.memory_space<vmem>>, vector<64x24xf32>
    %cst_6 = arith.constant dense<0.000000e+00> : vector<64x128xf32>
    %16 = tpu.matmul %15, %12, %cst_6 {dimension_numbers = #tpu.dot_dimension_numbers<[1], [0], [0], [1], [0, 0, 1, 1], [], []>} : vector<64x24xf32>, vector<24x128xf32>, vector<64x128xf32> -> vector<64x128xf32>
    %17 = arith.addf %14, %16 : vector<64x128xf32>
    %c0_7 = arith.constant 0 : index
    %c40 = arith.constant 40 : index
    %18 = vector.load %arg2[%c0_7, %c40] : memref<128x128xf32, #tpu.memory_space<vmem>>, vector<64x8xf32>
    %c0_8 = arith.constant 0 : index
    %c0_9 = arith.constant 0 : index
    %19 = vector.load %arg1[%c0_8, %c0_9] : memref<8x128xf32, #tpu.memory_space<vmem>>, vector<8x128xf32>
    %cst_10 = arith.constant dense<0.000000e+00> : vector<64x128xf32>
    %20 = tpu.matmul %18, %19, %cst_10 {dimension_numbers = #tpu.dot_dimension_numbers<[1], [0], [0], [1], [0, 0, 1, 1], [], []>} : vector<64x8xf32>, vector<8x128xf32>, vector<64x128xf32> -> vector<64x128xf32>
    %21 = arith.addf %17, %20 : vector<64x128xf32>
    %c0_11 = arith.constant 0 : index
    %c48 = arith.constant 48 : index
    %22 = vector.load %arg2[%c0_11, %c48] : memref<128x128xf32, #tpu.memory_space<vmem>>, vector<64x1xf32>
    %23 = vector.broadcast %22 : vector<64x1xf32> to vector<64x128xf32>
    %24 = arith.addf %21, %23 : vector<64x128xf32>
    %cst_12 = arith.constant 0.000000e+00 : f32
    %25 = vector.broadcast %cst_12 : f32 to vector<64x128xf32>
    %26 = arith.maximumf %24, %25 : vector<64x128xf32>
    %cst_13 = arith.constant dense<0.000000e+00> : vector<64x1xf32>
    %27 = tpu.matmul %26, %0, %cst_13 {dimension_numbers = #tpu.dot_dimension_numbers<[1], [0], [0], [1], [0, 0, 1, 1], [], []>} : vector<64x128xf32>, vector<128x1xf32>, vector<64x1xf32> -> vector<64x1xf32>
    %cst_14 = arith.constant 7.812500e-03 : f32
    %28 = vector.broadcast %cst_14 : f32 to vector<64x1xf32>
    %29 = arith.mulf %27, %28 : vector<64x1xf32>
    %30 = vector.broadcast %29 : vector<64x1xf32> to vector<64x128xf32>
    %31 = arith.subf %26, %30 : vector<64x128xf32>
    %32 = arith.mulf %31, %31 : vector<64x128xf32>
    %cst_15 = arith.constant dense<0.000000e+00> : vector<64x1xf32>
    %33 = tpu.matmul %32, %0, %cst_15 {dimension_numbers = #tpu.dot_dimension_numbers<[1], [0], [0], [1], [0, 0, 1, 1], [], []>} : vector<64x128xf32>, vector<128x1xf32>, vector<64x1xf32> -> vector<64x1xf32>
    %cst_16 = arith.constant 7.812500e-03 : f32
    %34 = vector.broadcast %cst_16 : f32 to vector<64x1xf32>
    %35 = arith.mulf %33, %34 : vector<64x1xf32>
    %cst_17 = arith.constant 9.99999974E-6 : f32
    %36 = vector.broadcast %cst_17 : f32 to vector<64x1xf32>
    %37 = arith.addf %35, %36 : vector<64x1xf32>
    %38 = math.rsqrt %37 : vector<64x1xf32>
    %39 = vector.broadcast %38 : vector<64x1xf32> to vector<64x128xf32>
    %40 = arith.mulf %31, %39 : vector<64x128xf32>
    %c64 = arith.constant 64 : index
    %c0_18 = arith.constant 0 : index
    %41 = vector.load %arg2[%c64, %c0_18] : memref<128x128xf32, #tpu.memory_space<vmem>>, vector<32x64xf32>
    %cst_19 = arith.constant dense<0.000000e+00> : vector<32x128xf32>
    %42 = tpu.matmul %41, %40, %cst_19 {dimension_numbers = #tpu.dot_dimension_numbers<[1], [0], [0], [1], [0, 0, 1, 1], [], []>} : vector<32x64xf32>, vector<64x128xf32>, vector<32x128xf32> -> vector<32x128xf32>
    %c64_20 = arith.constant 64 : index
    %c64_21 = arith.constant 64 : index
    %43 = vector.load %arg2[%c64_20, %c64_21] : memref<128x128xf32, #tpu.memory_space<vmem>>, vector<32x1xf32>
    %44 = vector.broadcast %43 : vector<32x1xf32> to vector<32x128xf32>
    %45 = arith.addf %42, %44 : vector<32x128xf32>
    %cst_22 = arith.constant 0.000000e+00 : f32
    %46 = vector.broadcast %cst_22 : f32 to vector<32x128xf32>
    %47 = arith.maximumf %45, %46 : vector<32x128xf32>
    %cst_23 = arith.constant dense<0.000000e+00> : vector<32x1xf32>
    %48 = tpu.matmul %47, %0, %cst_23 {dimension_numbers = #tpu.dot_dimension_numbers<[1], [0], [0], [1], [0, 0, 1, 1], [], []>} : vector<32x128xf32>, vector<128x1xf32>, vector<32x1xf32> -> vector<32x1xf32>
    %cst_24 = arith.constant 7.812500e-03 : f32
    %49 = vector.broadcast %cst_24 : f32 to vector<32x1xf32>
    %50 = arith.mulf %48, %49 : vector<32x1xf32>
    %51 = vector.broadcast %50 : vector<32x1xf32> to vector<32x128xf32>
    %52 = arith.subf %47, %51 : vector<32x128xf32>
    %53 = arith.mulf %52, %52 : vector<32x128xf32>
    %cst_25 = arith.constant dense<0.000000e+00> : vector<32x1xf32>
    %54 = tpu.matmul %53, %0, %cst_25 {dimension_numbers = #tpu.dot_dimension_numbers<[1], [0], [0], [1], [0, 0, 1, 1], [], []>} : vector<32x128xf32>, vector<128x1xf32>, vector<32x1xf32> -> vector<32x1xf32>
    %cst_26 = arith.constant 7.812500e-03 : f32
    %55 = vector.broadcast %cst_26 : f32 to vector<32x1xf32>
    %56 = arith.mulf %54, %55 : vector<32x1xf32>
    %cst_27 = arith.constant 9.99999974E-6 : f32
    %57 = vector.broadcast %cst_27 : f32 to vector<32x1xf32>
    %58 = arith.addf %56, %57 : vector<32x1xf32>
    %59 = math.rsqrt %58 : vector<32x1xf32>
    %60 = vector.broadcast %59 : vector<32x1xf32> to vector<32x128xf32>
    %61 = arith.mulf %52, %60 : vector<32x128xf32>
    %c96 = arith.constant 96 : index
    %c0_28 = arith.constant 0 : index
    %62 = vector.load %arg2[%c96, %c0_28] : memref<128x128xf32, #tpu.memory_space<vmem>>, vector<24x16xf32>
    %cst_29 = arith.constant dense<0.000000e+00> : vector<24x128xf32>
    %63 = tpu.matmul %62, %7, %cst_29 {dimension_numbers = #tpu.dot_dimension_numbers<[1], [0], [0], [1], [0, 0, 1, 1], [], []>} : vector<24x16xf32>, vector<16x128xf32>, vector<24x128xf32> -> vector<24x128xf32>
    %64 = arith.mulf %63, %12 : vector<24x128xf32>
    %cst_30 = arith.constant 1.000000e+00 : f32
    %65 = vector.broadcast %cst_30 : f32 to vector<1x24xf32>
    %cst_31 = arith.constant dense<0.000000e+00> : vector<1x128xf32>
    %66 = tpu.matmul %65, %64, %cst_31 {dimension_numbers = #tpu.dot_dimension_numbers<[1], [0], [0], [1], [0, 0, 1, 1], [], []>} : vector<1x24xf32>, vector<24x128xf32>, vector<1x128xf32> -> vector<1x128xf32>
    %c120 = arith.constant 120 : index
    %c0_32 = arith.constant 0 : index
    %67 = vector.load %arg2[%c120, %c0_32] : memref<128x128xf32, #tpu.memory_space<vmem>>, vector<1x32xf32>
    %cst_33 = arith.constant dense<0.000000e+00> : vector<1x128xf32>
    %68 = tpu.matmul %67, %61, %cst_33 {dimension_numbers = #tpu.dot_dimension_numbers<[1], [0], [0], [1], [0, 0, 1, 1], [], []>} : vector<1x32xf32>, vector<32x128xf32>, vector<1x128xf32> -> vector<1x128xf32>
    %69 = arith.addf %66, %68 : vector<1x128xf32>
    %c121 = arith.constant 121 : index
    %c0_34 = arith.constant 0 : index
    %70 = vector.load %arg2[%c121, %c0_34] : memref<128x128xf32, #tpu.memory_space<vmem>>, vector<1x1xf32>
    %71 = vector.broadcast %70 : vector<1x1xf32> to vector<1x128xf32>
    %72 = arith.addf %69, %71 : vector<1x128xf32>
    %c0_35 = arith.constant 0 : index
    %c0_36 = arith.constant 0 : index
    %73 = vector.load %arg3[%c0_35, %c0_36] : memref<1x128xf32, #tpu.memory_space<vmem>>, vector<1x128xf32>
    tpu.vector_store %arg3[%c0_35, %c0_36], %72 {strides = array<i32>} : memref<1x128xf32, #tpu.memory_space<vmem>>, vector<1x128xf32>,
    return
  }
}

</mosaic_0001>

<bundles_post_ra>
// kernel: tpu_custom_call.1
= control target key start
LH: loop header
LB: loop body
LE: loop exit
PB: predicated region body
PF: predicated region fallthrough
CT: control target
= control target key end

     0   :  { %8 = vsyncpa [#allocation3], 0  ;;  %s2640_s0 = inlined_call_operand.hbm [shape: s32[2,128], index: 0, kind: input, shape index: {}]   ;;  %s2641_s1 = inlined_call_operand.hbm [shape: f32[8,128], index: 1, kind: input, shape index: {}]   ;;  %s2642_s2 = inlined_call_operand.hbm [shape: f32[128,128], index: 2, kind: input, shape index: {}]   ;;  %s2643_s3 = inlined_call_operand.hbm [shape: f32[1,128], index: 3, kind: output, shape index: {}]  }
   0x1   :  { %9 = vsyncpa [#allocation6], 0 }
   0x2   :  { %10 = vsyncpa [#allocation4], 0  ;;  %s2241_s12 = smov [#allocation5]   ;;  %s2242_s14 = smov [#allocation2]  }
   0x3   :  { %s27_s13 = sshll.u32 %s2241_s12, 4  ;;  %s17_s15 = sshll.u32 %s2242_s14, 4  ;;  %s28_s13 = int_to_ptr.vmem [resolvable:$true] %s27_s13  ;;  %s18_s15 = int_to_ptr.vmem [resolvable:$true] %s17_s15 }
   0x4   :  { %s2147_s18 = scalar_lea.hbm %s2641_s1, 128 }
   0x5   :  { %p2148_p0 = scmp.ne.s32.totalorder %s2641_s1, %s2147_s18  ;;  %p2151_p1 = scmp.lt.u32.totalorder %s2147_s18, %s2641_s1 }
   0x7   :  { %p2153_p2 = pnand %p2151_p1, %p2148_p0 }
   0x9   :  { %2156 = shalt.err (!%p2153_p2)
}
   0xa   :  { %s2157_s23 = scalar_lea.vmem %s28_s13, 128  ;;  %p2162_p4 = scmp.lt.s32.totalorder %s28_s13, %s28_s13 }
   0xb   :  { %p2158_p3 = scmp.ne.s32.totalorder %s28_s13, %s2157_s23  ;;  %p2163_p5 = scmp.lt.s32.totalorder %s2157_s23, %s2157_s23 }
   0xd   :  { %p2164_p6 = por %p2163_p5, %p2162_p4 }
   0xf   :  { %p2165_p7 = pnand %p2164_p6, %p2158_p3 }
  0x11   :  { %2168 = shalt.err (!%p2165_p7)
}
  0x12   :  { %30 = dma.hbm_to_vmem [thread:$0]  %s2641_s1, 128, %s28_s13, [#allocation6]  }
  0x13   :  { %s2169_s28 = scalar_lea.hbm %s2640_s0, 32 }
  0x14   :  { %p2170_p8 = scmp.ne.s32.totalorder %s2640_s0, %s2169_s28  ;;  %p2173_p9 = scmp.lt.u32.totalorder %s2169_s28, %s2640_s0 }
  0x16   :  { %p2175_p10 = pnand %p2173_p9, %p2170_p8 }
  0x18   :  { %2178 = shalt.err (!%p2175_p10)
}
  0x19   :  { %s2179_s6 = scalar_lea.vmem %s18_s15, 32  ;;  %p2184_p12 = scmp.lt.s32.totalorder %s18_s15, %s18_s15 }
  0x1a   :  { %p2180_p11 = scmp.ne.s32.totalorder %s18_s15, %s2179_s6  ;;  %p2185_p13 = scmp.lt.s32.totalorder %s2179_s6, %s2179_s6 }
  0x1c   :  { %p2186_p0 = por %p2185_p13, %p2184_p12 }
  0x1e   :  { %p2187_p1 = pnand %p2186_p0, %p2180_p11 }
  0x20   :  { %2190 = shalt.err (!%p2187_p1)
}
  0x21   :  { %20 = dma.hbm_to_vmem [thread:$0]  %s2640_s0, 32, %s18_s15, [#allocation3]  }
  0x22   :  { %s2243_s8 = smov [#allocation7]   ;;  %s2191_s12 = scalar_lea.hbm %s2642_s2, 2048 }
  0x23   :  { %s36_s9 = sshll.u32 %s2243_s8, 4  ;;  %p2192_p2 = scmp.ne.s32.totalorder %s2642_s2, %s2191_s12  ;;  %s37_s9 = int_to_ptr.vmem [resolvable:$true] %s36_s9 }
  0x24   :  { %p2195_p3 = scmp.lt.u32.totalorder %s2191_s12, %s2642_s2 }
  0x26   :  { %p2197_p4 = pnand %p2195_p3, %p2192_p2 }
  0x28   :  { %2200 = shalt.err (!%p2197_p4)
}
  0x29   :  { %s2201_s18 = scalar_lea.vmem %s37_s9, 2048  ;;  %p2206_p6 = scmp.lt.s32.totalorder %s37_s9, %s37_s9 }
  0x2a   :  { %p2202_p5 = scmp.ne.s32.totalorder %s37_s9, %s2201_s18  ;;  %p2207_p7 = scmp.lt.s32.totalorder %s2201_s18, %s2201_s18 }
  0x2c   :  { %p2208_p8 = por %p2207_p7, %p2206_p6 }
  0x2e   :  { %p2209_p9 = pnand %p2208_p8, %p2202_p5 }
  0x30   :  { %2212 = shalt.err (!%p2209_p9)
}
  0x31   :  { %s2244_s0 = smov 128   ;;  %s2245_s15 = smov 8  }
  0x32   :  { %42 = dma.hbm_to_vmem [thread:$0]  %s2642_s2, 2048, %s37_s9, [#allocation6], %s2244_s0, %s2244_s0, %s2245_s15  }
  0x33   :  { %2235 = dma.done.wait [#allocation3], 32  }
  0x34   :  { %2236 = vsyncadd [#allocation3], 4294967264 }
  0x35   :  { %2237 = dma.done.wait [#allocation6], 2176  }
  0x36   :  { %2238 = vsyncadd [#allocation6], 4294965120  ;;  %v54_v0 = vlaneseq  ;;  %v2246_v1 = vmov 1.0|1.0   ;;  %v2322_v4 = vld [vmem:[#allocation7] sm:$0xff]  ;;  %v2324_v5 = vld [vmem:[#allocation7 + $0x10] sm:$0xff] }
  0x37   :  { %1991 = vmatprep.subr.bf16.mxu1 %v2246_v1  ;;  %s2247_s2 = smov 112   ;;  %v2334_v7 = vld [vmem:[#allocation7 + $0x8] sm:$0xff]  ;;  %v2336_v8 = vld [vmem:[#allocation7 + $0x18] sm:$0xff]  ;;  %v2338_v9 = vld [vmem:[#allocation2 + $0x1] ss:$0 sm:$0xff]  ;;  %v2248_v13 = vmov 1.0  }
  0x38   :  { %v2314_v2 = vshrl.u32 %v54_v0, 7  ;;  %1992 = vmatpush3.bf16.msra.mxu1 %v2246_v1  ;;  %97 = vrot.lane.b32.xlu0 %v2322_v4, %s2247_s2  ;;  %v1525_v10 = vld [vmem:[#allocation2] ss:$0 sm:$0xff]  ;;  %v2358_v11 = vld [vmem:[#allocation7 + $0x20] sm:$0xff]  ;;  %v2360_v12 = vld [vmem:[#allocation7 + $0x28] sm:$0xff]  ;;  %s2249_s21 = smov 88  }
  0x39   :  { %1993 = vmatprep.subr.bf16.mxu1 %v2246_v1  ;;  %101 = vrot.lane.b32.xlu1 %v2324_v5, %s2247_s2  ;;  %v2380_v15 = vld [vmem:[#allocation7 + $0x30] sm:$0xff]  ;;  %v2382_v16 = vld [vmem:[#allocation7 + $0x38] sm:$0xff]  ;;  %v2250_v17 = vmov 48   ;;  %vm113_vm7 = vcmask 195584   ;;  %vm235_vm8 = vcmask 130048   ;;  %vm374_vm9 = vcmask 64512  }
  0x3a   :  { %v2319_v3 = vadd.s32 8, %v2314_v2  ;;  %v2332_v6 = vadd.s32 16, %v2314_v2  ;;  %vm72_vm0 = vcmp.eq.s32.totalorder %v2314_v2, %v2338_v9  ;;  %vm61_vm4 = vcmp.eq.s32.totalorder %v2314_v2, %v1525_v10  ;;  %2116 = vset.pattern.permute.xlu1 %v2250_v17  ;;  %2115 = vset.pattern.permute.xlu0 %v2250_v17  ;;  %v357_v22 = vld [vmem:[#allocation5] sm:$0xff]  ;;  %s2256_s22 = smov [#allocation8]  }
  0x3b   :  { %vm922_vm10 = vcmask 523264   ;;  %vm2254_vm11 = vmmov 0   ;;  %vm1354_vm12 = vcmask 261120   ;;  %s1515_s23 = sshll.u32 %s2256_s22, 4  ;;  %s1516_s23 = int_to_ptr.vmem [resolvable:$true] %s1515_s23 }
  0x3c   :  { %1994 = vmatpush3.bf16.msra.mxu1 %v2246_v1  ;;  %vm73_vm1 = vcmp.eq.s32.totalorder %v2319_v3, %v2338_v9  ;;  %99 = vrot.lane.b32.xlu0 %v2334_v7, %s2247_s2  ;;  %vm74_vm3 = vcmp.eq.s32.totalorder %v2332_v6, %v2338_v9  ;;  %vm62_vm5 = vcmp.eq.s32.totalorder %v2319_v3, %v1525_v10  ;;  %s2213_s24 = scalar_lea.vmem %s1516_s23, 16  ;;  %s2217_s25 = scalar_lea.vmem %s1516_s23, 32 }
  0x3d   :  { %1995 = vmatprep.subr.bf16.mxu1 %v2246_v1  ;;  %vm1983_vm2 = vmpackc.low %vm73_vm1, %vm72_vm0  ;;  %103 = vrot.lane.b32.xlu1 %v2336_v8, %s2247_s2  ;;  %p2214_p10 = scmp.ne.s32.totalorder %s1516_s23, %s2213_s24  ;;  %p2218_p11 = scmp.lt.s32.totalorder %s1516_s23, %s1516_s23 }
  0x3e   :  { %1984 = vmatprep.subr.msk.bf16.mxu0 %vm1983_vm2, %v2246_v1  ;;  %vm2376_vm6 = vmpackc.low %vm62_vm5, %vm61_vm4  ;;  %p2219_p12 = scmp.lt.s32.totalorder %s2217_s25, %s2213_s24 }
  0x3f   :  { %1986 = vmatpush3.bf16.msk.msra.mxu0 %vm1983_vm2, %v2246_v1 }
  0x40   :  { %1996 = vmatpush3.bf16.msra.mxu1 %v2246_v1  ;;  %1720 = vmatprep.subr.msk.mxu0 %vm74_vm3, %v2248_v13  ;;  %p2220_p13 = por %p2219_p12, %p2218_p11 }
  0x41   :  { %1997 = vmatprep.subr.bf16.mxu1 %v2246_v1  ;;  %105 = vrot.lane.b32.xlu0 %v2358_v11, %s2247_s2 }
  0x42   :  { %107 = vrot.lane.b32.xlu1 %v2360_v12, %s2247_s2  ;;  %p2221_p0 = pnand %p2220_p13, %p2214_p10 }
  0x43   :  { %1721 = vmatpush3.msk.msra.mxu0 %vm74_vm3, %v2248_v13 }
  0x44   :  { %1998 = vmatpush3.bf16.msra.mxu1 %v2246_v1  ;;  %1988 = vmatprep.subr.msk.bf16.mxu0 %vm2376_vm6, %v2246_v1 }
  0x45   :  { %1999 = vmatprep.subr.bf16.mxu1 %v2246_v1  ;;  %109 = vrot.lane.b32.xlu0 %v2380_v15, %s2247_s2 }
  0x46   :  { %111 = vrot.lane.b32.xlu1 %v2382_v16, %s2247_s2 }
  0x48   :  { %2000 = vmatpush3.bf16.msra.mxu1 %v2246_v1 }
  0x49   :  { %2001 = vmatprep.subr.bf16.mxu1 %v2246_v1  ;;  %358 = vrot.lane.b32.xlu0 %v2322_v4, %s2249_s21 }
  0x4a   :  { %360 = vrot.lane.b32.xlu1 %v2334_v7, %s2249_s21 }
  0x4c   :  { %2002 = vmatpush3.bf16.msra.mxu1 %v2246_v1 }
  0x4d   :  { %2003 = vmatprep.subr.bf16.mxu1 %v2246_v1  ;;  %362 = vrot.lane.b32.xlu0 %v2324_v5, %s2249_s21 }
  0x4e   :  { %364 = vrot.lane.b32.xlu1 %v2336_v8, %s2249_s21 }
  0x50   :  { %2004 = vmatpush3.bf16.msra.mxu1 %v2246_v1 }
  0x51   :  { %2005 = vmatprep.subr.bf16.mxu1 %v2246_v1  ;;  %366 = vrot.lane.b32.xlu0 %v2358_v11, %s2249_s21 }
  0x52   :  { %368 = vrot.lane.b32.xlu1 %v2360_v12, %s2249_s21 }
  0x54   :  { %2006 = vmatpush3.bf16.msra.mxu1 %v2246_v1 }
  0x55   :  { %2007 = vmatprep.subr.bf16.mxu1 %v2246_v1  ;;  %370 = vrot.lane.b32.xlu0 %v2380_v15, %s2249_s21 }
  0x56   :  { %372 = vrot.lane.b32.xlu1 %v2382_v16, %s2249_s21 }
  0x59   :  { %505 = vperm.xlu0 %2115, %v2322_v4  }
  0x5a   :  { %509 = vperm.xlu1 %2116, %v2334_v7  }
  0x5d   :  { %517 = vperm.xlu0 %2115, %v2336_v8  }
  0x5e   :  { %513 = vperm.xlu1 %2116, %v2324_v5  }
  0x61   :  { %525 = vperm.xlu0 %2115, %v2360_v12  }
  0x62   :  { %521 = vperm.xlu1 %2116, %v2358_v11  }
  0x65   :  { %533 = vperm.xlu0 %2115, %v2382_v16  }
  0x66   :  { %529 = vperm.xlu1 %2116, %v2380_v15  }
  0xaa   :  { %v98_v18 = vpop.permute.xlu0 %97 }
  0xab   :  { %v102_v19 = vpop.permute.xlu1 %101  ;;  %1722 = vmatprep.mubr.msk.f32.mxu0 %vm113_vm7, %v98_v18 }
  0xae   :  { %v100_v20 = vpop.permute.xlu0 %99 }
  0xaf   :  { %v104_v21 = vpop.permute.xlu1 %103  ;;  %1723 = vmatmul.mubr.msk.f32.vlgmr.msra.gmra.mrb[0].mxu0 %vm113_vm7, %v100_v20 }
  0xb0   :  { %1725 = vmatprep.mubr.msk.f32.mxu0 %vm113_vm7, %v102_v19  ;;  %1990 = vmatpush3.bf16.msk.msra.mxu0 %vm2376_vm6, %v2246_v1 }
  0xb1   :  { %1750 = vmatprep.subr.mxu0 %v357_v22 }
  0xb3   :  { %v106_v23 = vpop.permute.xlu0 %105  ;;  %1726 = vmatmul.mubr.msk.f32.gmra.mrb[2].mxu0 %vm113_vm7, %v104_v21 }
  0xb4   :  { %v108_v24 = vpop.permute.xlu1 %107  ;;  %1728 = vmatprep.mubr.msk.f32.mxu0 %vm113_vm7, %v106_v23 }
  0xb7   :  { %v110_v25 = vpop.permute.xlu0 %109  ;;  %1729 = vmatmul.mubr.msk.f32.gmra.mrb[4].mxu0 %vm113_vm7, %v108_v24 }
  0xb8   :  { %v112_v26 = vpop.permute.xlu1 %111  ;;  %1731 = vmatprep.mubr.msk.f32.mxu0 %vm113_vm7, %v110_v25 }
  0xbb   :  { %1732 = vmatmul.mubr.msk.f32.gmra.mrb[6].mxu0 %vm113_vm7, %v112_v26  ;;  %v359_v27 = vpop.permute.xlu0 %358 }
  0xbc   :  { %1738 = vmatprep.mubr.msk.f32.mxu0 %vm235_vm8, %v2322_v4  ;;  %v361_v28 = vpop.permute.xlu1 %360 }
  0xbf   :  { %1739 = vmatmul.mubr.msk.f32.vlgmr.msra.gmra.mrb[0].mxu0 %vm235_vm8, %v2334_v7  ;;  %v363_v29 = vpop.permute.xlu0 %362  ;;  %v2251_v7 = vmov 0  }
  0xc0   :  { %1751 = vmatpush3.msra.mxu0 %v357_v22  ;;  %1741 = vmatprep.mubr.msk.f32.mxu0 %vm235_vm8, %v2324_v5  ;;  %v365_v30 = vpop.permute.xlu1 %364 }
  0xc1   :  { %2117 = vset.pattern.permute.xlu0 %v2251_v7  ;;  %2118 = vset.pattern.permute.xlu1 %v2251_v7 }
  0xc3   :  { %1742 = vmatmul.mubr.msk.f32.gmra.mrb[2].mxu0 %vm235_vm8, %v2336_v8  ;;  %v367_v31 = vpop.permute.xlu0 %366 }
  0xc4   :  { %1744 = vmatprep.mubr.msk.f32.mxu0 %vm235_vm8, %v2358_v11  ;;  %v369_v32 = vpop.permute.xlu1 %368 }
  0xc7   :  { %1745 = vmatmul.mubr.msk.f32.gmra.mrb[4].mxu0 %vm235_vm8, %v2360_v12  ;;  %v371_v33 = vpop.permute.xlu0 %370 }
  0xc8   :  { %1747 = vmatprep.mubr.msk.f32.mxu0 %vm235_vm8, %v2380_v15  ;;  %v373_v34 = vpop.permute.xlu1 %372 }
  0xcb   :  { %1748 = vmatmul.mubr.msk.f32.gmra.mrb[6].mxu0 %vm235_vm8, %v2382_v16 }
  0xcc   :  { %1752 = vmatprep.mubr.msk.f32.mxu0 %vm374_vm9, %v359_v27 }
  0xcf   :  { %1753 = vmatmul.mubr.msk.f32.vlgmr.msra.gmra.mrb[0].mxu0 %vm374_vm9, %v361_v28 }
  0xd0   :  { %1755 = vmatprep.mubr.msk.f32.mxu0 %vm374_vm9, %v363_v29 }
  0xd3   :  { %1756 = vmatmul.mubr.msk.f32.gmra.mrb[2].mxu0 %vm374_vm9, %v365_v30 }
  0xd4   :  { %1758 = vmatprep.mubr.msk.f32.mxu0 %vm374_vm9, %v367_v31 }
  0xd7   :  { %1759 = vmatmul.mubr.msk.f32.gmra.mrb[4].mxu0 %vm374_vm9, %v369_v32 }
  0xd8   :  { %1761 = vmatprep.mubr.msk.f32.mxu0 %vm374_vm9, %v371_v33  ;;  %v506_v35 = vpop.permute.xlu0 %505 }
  0xd9   :  { %v510_v36 = vpop.permute.xlu1 %509 }
  0xdb   :  { %1762 = vmatmul.mubr.msk.f32.gmra.mrb[6].mxu0 %vm374_vm9, %v373_v34 }
  0xdc   :  { %v518_v37 = vpop.permute.xlu0 %517 }
  0xdd   :  { %v514_v39 = vpop.permute.xlu1 %513 }
  0xe0   :  { %v526_v48 = vpop.permute.xlu0 %525 }
  0xe1   :  { %v522_v50 = vpop.permute.xlu1 %521 }
  0xe4   :  { %v534_v57 = vpop.permute.xlu0 %533 }
  0xe5   :  { %v530_v60 = vpop.permute.xlu1 %529 }
 0x1a2   :  { %v1754_v38 = vpop.f32.mrb[0].mxu0 }
 0x1a3   :  { %v2446_v40 = vadd.f32 %v1754_v38, %v510_v36  ;;  %v457_v41 = vpop.f32.mrb[1].mxu0 }
 0x1a4   :  { %v2448_v42 = vadd.f32 %v506_v35, %v457_v41 }
 0x1a5   :  { %v545_v45 = vmax.f32 %v2446_v40, 0.0 }
 0x1a6   :  { %v544_v43 = vmax.f32 %v2448_v42, 0.0  ;;  %v1757_v44 = vpop.f32.mrb[2].mxu0 }
 0x1a7   :  { %v2452_v46 = vadd.f32 %v1757_v44, %v518_v37  ;;  %v467_v47 = vpop.f32.mrb[3].mxu0 }
 0x1a8   :  { %v2454_v49 = vadd.f32 %v514_v39, %v467_v47  ;;  %1796 = vmatprep.mubr.f32.mxu1 %v544_v43 }
 0x1a9   :  { %1797 = vmatmul.mubr.f32.vlgmr.msra.gmra.mrb[0].mxu1 %v545_v45  ;;  %v547_v53 = vmax.f32 %v2452_v46, 0.0 }
 0x1aa   :  { %v546_v51 = vmax.f32 %v2454_v49, 0.0  ;;  %v1760_v52 = vpop.f32.mrb[4].mxu0  ;;  %2008 = vmatpush3.bf16.msra.mxu1 %v2246_v1 }
 0x1ab   :  { %v2463_v54 = vadd.f32 %v1760_v52, %v526_v48  ;;  %v477_v55 = vpop.f32.mrb[5].mxu0  ;;  %2009 = vmatprep.subr.bf16.mxu1 %v2246_v1 }
 0x1ac   :  { %v2466_v56 = vadd.f32 %v522_v50, %v477_v55  ;;  %1799 = vmatprep.mubr.f32.mxu1 %v546_v51 }
 0x1ad   :  { %1800 = vmatmul.mubr.f32.gmra.mrb[2].mxu1 %v547_v53  ;;  %v549_v61 = vmax.f32 %v2463_v54, 0.0 }
 0x1ae   :  { %v548_v58 = vmax.f32 %v2466_v56, 0.0  ;;  %v1763_v59 = vpop.f32.mrb[6].mxu0  ;;  %2010 = vmatpush3.bf16.msra.mxu1 %v2246_v1 }
 0x1af   :  { %v2475_v62 = vadd.f32 %v1763_v59, %v534_v57  ;;  %v487_v63 = vpop.f32.mrb[7].mxu0  ;;  %2011 = vmatprep.subr.bf16.mxu1 %v2246_v1 }
 0x1b0   :  { %v2478_v0 = vadd.f32 %v530_v60, %v487_v63  ;;  %1802 = vmatprep.mubr.f32.mxu1 %v548_v58 }
 0x1b1   :  { %1803 = vmatmul.mubr.f32.gmra.mrb[4].mxu1 %v549_v61  ;;  %v551_v5 = vmax.f32 %v2475_v62, 0.0 }
 0x1b2   :  { %v550_v4 = vmax.f32 %v2478_v0, 0.0  ;;  %2012 = vmatpush3.bf16.msra.mxu1 %v2246_v1 }
 0x1b3   :  { %2013 = vmatprep.subr.bf16.mxu1 %v2246_v1 }
 0x1b4   :  { %1805 = vmatprep.mubr.f32.mxu1 %v550_v4 }
 0x1b5   :  { %1806 = vmatmul.mubr.f32.gmra.mrb[6].mxu1 %v551_v5 }
 0x1b6   :  { %2014 = vmatpush3.bf16.msra.mxu1 %v2246_v1 }
 0x1b7   :  { %2015 = vmatprep.subr.bf16.mxu1 %v2246_v1 }
 0x1ba   :  { %2016 = vmatpush3.bf16.msra.mxu1 %v2246_v1 }
 0x1bb   :  { %2017 = vmatprep.subr.bf16.mxu1 %v2246_v1 }
 0x1be   :  { %2018 = vmatpush3.bf16.msra.mxu1 %v2246_v1 }
 0x1bf   :  { %2019 = vmatprep.subr.bf16.mxu1 %v2246_v1 }
 0x1c2   :  { %2020 = vmatpush3.bf16.msra.mxu1 %v2246_v1 }
 0x1c3   :  { %2021 = vmatprep.subr.bf16.mxu1 %v2246_v1 }
 0x1c6   :  { %2022 = vmatpush3.bf16.msra.mxu1 %v2246_v1 }
 0x1c7   :  { %2055 = vmatprep.subr.bf16.mxu1 %v2246_v1 }
 0x27c   :  { %v1798_v8 = vpop.f32.mrb[0].mxu1 }
 0x27d   :  { %v658_v10 = vmul.f32 0.0078125, %v1798_v8  ;;  %v618_v11 = vpop.f32.mrb[1].mxu1 }
 0x27e   :  { %v657_v12 = vmul.f32 0.0078125, %v618_v11 }
 0x27f   :  { %672 = vperm.xlu0 %2117, %v658_v10  }
 0x280   :  { %667 = vperm.xlu1 %2118, %v657_v12   ;;  %v1801_v15 = vpop.f32.mrb[2].mxu1 }
 0x281   :  { %v628_v16 = vpop.f32.mrb[3].mxu1  ;;  %v660_v20 = vmul.f32 0.0078125, %v1801_v15 }
 0x282   :  { %v659_v17 = vmul.f32 0.0078125, %v628_v16 }
 0x284   :  { %677 = vperm.xlu1 %2118, %v659_v17   ;;  %v1804_v18 = vpop.f32.mrb[4].mxu1 }
 0x285   :  { %v638_v19 = vpop.f32.mrb[5].mxu1  ;;  %v662_v24 = vmul.f32 0.0078125, %v1804_v18 }
 0x286   :  { %v661_v21 = vmul.f32 0.0078125, %v638_v19 }
 0x288   :  { %682 = vperm.xlu1 %2118, %v660_v20   ;;  %687 = vperm.xlu0 %2117, %v661_v21   ;;  %v1807_v22 = vpop.f32.mrb[6].mxu1 }
 0x289   :  { %v648_v23 = vpop.f32.mrb[7].mxu1  ;;  %v664_v26 = vmul.f32 0.0078125, %v1807_v22 }
 0x28a   :  { %v663_v25 = vmul.f32 0.0078125, %v648_v23 }
 0x28c   :  { %692 = vperm.xlu1 %2118, %v662_v24   ;;  %697 = vperm.xlu0 %2117, %v663_v25  }
 0x290   :  { %702 = vperm.xlu1 %2118, %v664_v26  }
 0x2fe   :  { %v673_v27 = vpop.permute.xlu0 %672 }
 0x2ff   :  { %v2506_v28 = vsub.f32 %v545_v45, %v673_v27  ;;  %v668_v29 = vpop.permute.xlu1 %667  ;;  %v898_v27 = vld [vmem:[#allocation7 + $0x40] sm:$0xff] }
 0x300   :  { %v2510_v30 = vsub.f32 %v544_v43, %v668_v29  ;;  %1868 = vmatprep.mubr.msk.f32.mxu0 %vm922_vm10, %v898_v27  ;;  %v899_v29 = vld [vmem:[#allocation7 + $0x48] sm:$0xff] }
 0x301   :  { %v714_v32 = vmul.f32 %v2506_v28, %v2506_v28 }
 0x302   :  { %v713_v31 = vmul.f32 %v2510_v30, %v2510_v30 }
 0x303   :  { %v678_v33 = vpop.permute.xlu1 %677 }
 0x304   :  { %v2518_v34 = vsub.f32 %v546_v51, %v678_v33  ;;  %1840 = vmatprep.mubr.f32.mxu1 %v713_v31  ;;  %v2252_v31 = vmov 64   ;;  %v901_v33 = vld [vmem:[#allocation7 + $0x58] sm:$0xff] }
 0x305   :  { %1841 = vmatmul.mubr.f32.vlgmr.msra.gmra.mrb[8].mxu1 %v714_v32  ;;  %v900_v32 = vld [vmem:[#allocation7 + $0x50] sm:$0xff] }
 0x306   :  { %v715_v35 = vmul.f32 %v2518_v34, %v2518_v34  ;;  %2056 = vmatpush3.bf16.msra.mxu1 %v2246_v1 }
 0x307   :  { %v683_v36 = vpop.permute.xlu1 %682  ;;  %v688_v37 = vpop.permute.xlu0 %687  ;;  %2057 = vmatprep.subr.bf16.mxu1 %v2246_v1 }
 0x308   :  { %v2526_v38 = vsub.f32 %v547_v53, %v683_v36  ;;  %v2530_v39 = vsub.f32 %v548_v58, %v688_v37  ;;  %1843 = vmatprep.mubr.f32.mxu1 %v715_v35 }
 0x30a   :  { %v716_v40 = vmul.f32 %v2526_v38, %v2526_v38  ;;  %v717_v41 = vmul.f32 %v2530_v39, %v2530_v39  ;;  %2058 = vmatpush3.bf16.msra.mxu1 %v2246_v1 }
 0x30b   :  { %v693_v42 = vpop.permute.xlu1 %692  ;;  %v698_v43 = vpop.permute.xlu0 %697  ;;  %2059 = vmatprep.subr.bf16.mxu1 %v2246_v1 }
 0x30c   :  { %v2540_v44 = vsub.f32 %v549_v61, %v693_v42  ;;  %v2544_v45 = vsub.f32 %v550_v4, %v698_v43  ;;  %1844 = vmatmul.mubr.f32.gmra.mrb[10].mxu1 %v716_v40 }
 0x30d   :  { %1846 = vmatprep.mubr.f32.mxu1 %v717_v41 }
 0x30e   :  { %v718_v46 = vmul.f32 %v2540_v44, %v2540_v44  ;;  %v719_v47 = vmul.f32 %v2544_v45, %v2544_v45  ;;  %2060 = vmatpush3.bf16.msra.mxu1 %v2246_v1 }
 0x30f   :  { %v703_v48 = vpop.permute.xlu1 %702  ;;  %2061 = vmatprep.subr.bf16.mxu1 %v2246_v1 }
 0x310   :  { %v2554_v49 = vsub.f32 %v551_v5, %v703_v48  ;;  %1847 = vmatmul.mubr.f32.gmra.mrb[12].mxu1 %v718_v46 }
 0x311   :  { %1849 = vmatprep.mubr.f32.mxu1 %v719_v47 }
 0x312   :  { %v720_v50 = vmul.f32 %v2554_v49, %v2554_v49  ;;  %2062 = vmatpush3.bf16.msra.mxu1 %v2246_v1 }
 0x313   :  { %2063 = vmatprep.subr.bf16.mxu1 %v2246_v1 }
 0x314   :  { %1850 = vmatmul.mubr.f32.gmra.mrb[14].mxu1 %v720_v50 }
 0x316   :  { %2064 = vmatpush3.bf16.msra.mxu1 %v2246_v1 }
 0x317   :  { %2065 = vmatprep.subr.bf16.mxu1 %v2246_v1 }
 0x31a   :  { %2066 = vmatpush3.bf16.msra.mxu1 %v2246_v1 }
 0x31b   :  { %2067 = vmatprep.subr.bf16.mxu1 %v2246_v1 }
 0x31e   :  { %2068 = vmatpush3.bf16.msra.mxu1 %v2246_v1 }
 0x31f   :  { %2069 = vmatprep.subr.bf16.mxu1 %v2246_v1 }
 0x322   :  { %2070 = vmatpush3.bf16.msra.mxu1 %v2246_v1 }
 0x3d8   :  { %v1842_v51 = vpop.f32.mrb[8].mxu1 }
 0x3d9   :  { %v827_v52 = vmul.f32 0.0078125, %v1842_v51  ;;  %v787_v53 = vpop.f32.mrb[9].mxu1 }
 0x3da   :  { %v826_v54 = vmul.f32 0.0078125, %v787_v53 }
 0x3db   :  { %v835_v55 = vadd.f32 1e-05, %v827_v52 }
 0x3dc   :  { %v834_v56 = vadd.f32 1e-05, %v826_v54 }
 0x3dd   :  { %2123 = vrsqrt.f32 %v835_v55 }
 0x3de   :  { %2125 = vrsqrt.f32 %v834_v56 }
 0x3df   :  { %v1845_v57 = vpop.f32.mrb[10].mxu1 }
 0x3e0   :  { %v829_v58 = vmul.f32 0.0078125, %v1845_v57  ;;  %v797_v59 = vpop.f32.mrb[11].mxu1 }
 0x3e1   :  { %v828_v60 = vmul.f32 0.0078125, %v797_v59 }
 0x3e2   :  { %v837_v61 = vadd.f32 1e-05, %v829_v58 }
 0x3e3   :  { %v836_v62 = vadd.f32 1e-05, %v828_v60  ;;  %v1848_v63 = vpop.f32.mrb[12].mxu1 }
 0x3e4   :  { %2127 = vrsqrt.f32 %v837_v61  ;;  %v831_v0 = vmul.f32 0.0078125, %v1848_v63  ;;  %v807_v4 = vpop.f32.mrb[13].mxu1 }
 0x3e5   :  { %2129 = vrsqrt.f32 %v836_v62  ;;  %v830_v5 = vmul.f32 0.0078125, %v807_v4 }
 0x3e6   :  { %v839_v8 = vadd.f32 1e-05, %v831_v0 }
 0x3e7   :  { %v2124_v10 = vpop.eup %2123  ;;  %v838_v11 = vadd.f32 1e-05, %v830_v5  ;;  %v1851_v12 = vpop.f32.mrb[14].mxu1 }
 0x3e8   :  { %v2126_v15 = vpop.eup %2125  ;;  %2131 = vrsqrt.f32 %v839_v8  ;;  %v833_v16 = vmul.f32 0.0078125, %v1851_v12  ;;  %857 = vperm.xlu1 %2118, %v2124_v10   ;;  %v817_v17 = vpop.f32.mrb[15].mxu1 }
 0x3e9   :  { %2133 = vrsqrt.f32 %v838_v11  ;;  %v832_v18 = vmul.f32 0.0078125, %v817_v17  ;;  %852 = vperm.xlu0 %2117, %v2126_v15  }
 0x3ea   :  { %v841_v19 = vadd.f32 1e-05, %v833_v16 }
 0x3eb   :  { %v840_v20 = vadd.f32 1e-05, %v832_v18 }
 0x3ec   :  { %2135 = vrsqrt.f32 %v841_v19  ;;  %v2253_v19 = vmov 0.0|0.0  }
 0x3ed   :  { %2137 = vrsqrt.f32 %v840_v20  ;;  %v2255_v20 = vmov 0.0   ;;  %2074 = vmatprep.subr.bf16.mxu1 %v2253_v19 }
 0x3ee   :  { %v2128_v21 = vpop.eup %2127 }
 0x3ef   :  { %v2130_v22 = vpop.eup %2129  ;;  %867 = vperm.xlu1 %2118, %v2128_v21   ;;  %v1258_v21 = vld [vmem:[#allocation7 + $0x60] sm:$0xff] }
 0x3f0   :  { %862 = vperm.xlu0 %2117, %v2130_v22   ;;  %v1259_v22 = vld [vmem:[#allocation7 + $0x68] sm:$0xff] }
 0x3f2   :  { %v2132_v23 = vpop.eup %2131 }
 0x3f3   :  { %v2134_v24 = vpop.eup %2133  ;;  %877 = vperm.xlu1 %2118, %v2132_v23   ;;  %v1260_v23 = vld [vmem:[#allocation7 + $0x70] sm:$0xff] }
 0x3f4   :  { %872 = vperm.xlu0 %2117, %v2134_v24  }
 0x3f6   :  { %v2136_v25 = vpop.eup %2135 }
 0x3f7   :  { %v2138_v26 = vpop.eup %2137  ;;  %887 = vperm.xlu1 %2118, %v2136_v25  }
 0x3f8   :  { %882 = vperm.xlu0 %2117, %v2138_v26  }
 0x3fb   :  { %2120 = vset.pattern.permute.xlu1 %v2252_v31 }
 0x3fc   :  { %2119 = vset.pattern.permute.xlu0 %v2252_v31  ;;  %909 = vperm.xlu1 %2120, %v899_v29  }
 0x3fd   :  { %904 = vperm.xlu0 %2119, %v898_v27  }
 0x400   :  { %914 = vperm.xlu1 %2120, %v900_v32  }
 0x401   :  { %919 = vperm.xlu0 %2119, %v901_v33  }
 0x404   :  { %2122 = vset.pattern.permute.xlu1 %v2251_v7 }
 0x405   :  { %2121 = vset.pattern.permute.xlu0 %v2251_v7 }
 0x467   :  { %v858_v35 = vpop.permute.xlu1 %857 }
 0x468   :  { %v891_v36 = vmul.f32 %v858_v35, %v2506_v28  ;;  %v853_v37 = vpop.permute.xlu0 %852 }
 0x469   :  { %v890_v40 = vmul.f32 %v853_v37, %v2510_v30  ;;  %v1529_v37 = vsel %vm72_vm0, 1.0, %v2255_v20 }
 0x46b   :  { %v2023_v41 = vpack.c.bf16 %v891_v36, %v890_v40 }
 0x46d   :  { %2024 = vmatprep.subr.bf16.mxu0 %v2023_v41 }
 0x46e   :  { %v868_v42 = vpop.permute.xlu1 %867  ;;  %2026 = vmatpush3.bf16.msra.mxu0 %v2023_v41  ;;  %v1530_v41 = vsel %vm73_vm1, 1.0, %v2255_v20 }
 0x46f   :  { %v893_v43 = vmul.f32 %v868_v42, %v2526_v38  ;;  %v863_v46 = vpop.permute.xlu0 %862 }
 0x470   :  { %v892_v47 = vmul.f32 %v863_v46, %v2518_v34 }
 0x472   :  { %v2027_v48 = vpack.c.bf16 %v893_v43, %v892_v47  ;;  %v878_v50 = vpop.permute.xlu1 %877 }
 0x473   :  { %v895_v51 = vmul.f32 %v878_v50, %v2540_v44  ;;  %v873_v7 = vpop.permute.xlu0 %872 }
 0x474   :  { %v894_v52 = vmul.f32 %v873_v7, %v2530_v39  ;;  %2028 = vmatprep.subr.bf16.mxu0 %v2027_v48 }
 0x475   :  { %2030 = vmatpush3.bf16.msra.mxu0 %v2027_v48 }
 0x476   :  { %v2031_v28 = vpack.c.bf16 %v895_v51, %v894_v52  ;;  %v888_v30 = vpop.permute.xlu1 %887 }
 0x477   :  { %v897_v53 = vmul.f32 %v888_v30, %v2554_v49  ;;  %v883_v54 = vpop.permute.xlu0 %882 }
 0x478   :  { %v896_v55 = vmul.f32 %v883_v54, %v2544_v45  ;;  %2032 = vmatprep.subr.bf16.mxu0 %v2031_v28 }
 0x479   :  { %2034 = vmatpush3.bf16.msra.mxu0 %v2031_v28 }
 0x47a   :  { %v2035_v38 = vpack.c.bf16 %v897_v53, %v896_v55 }
 0x47b   :  { %v910_v39 = vpop.permute.xlu1 %909 }
 0x47c   :  { %2036 = vmatprep.subr.bf16.mxu0 %v2035_v38  ;;  %v905_v34 = vpop.permute.xlu0 %904 }
 0x47d   :  { %2038 = vmatpush3.bf16.msra.mxu0 %v2035_v38 }
 0x47e   :  { %2039 = vmatprep.subr.bf16.mxu0 %v2246_v1 }
 0x47f   :  { %v915_v61 = vpop.permute.xlu1 %914 }
 0x480   :  { %1869 = vmatmul.mubr.msk.f32.vlgmr.msra.gmra.mrb[8].mxu0 %vm922_vm10, %v899_v29  ;;  %v920_v58 = vpop.permute.xlu0 %919 }
 0x481   :  { %1871 = vmatprep.mubr.msk.f32.mxu0 %vm922_vm10, %v900_v32  ;;  %2040 = vmatpush3.bf16.msra.mxu0 %v2246_v1 }
 0x482   :  { %2041 = vmatprep.subr.bf16.mxu0 %v2246_v1 }
 0x484   :  { %1872 = vmatmul.mubr.msk.f32.gmra.mrb[10].mxu0 %vm922_vm10, %v901_v33 }
 0x485   :  { %2042 = vmatpush3.bf16.msra.mxu0 %v2246_v1 }
 0x486   :  { %2043 = vmatprep.subr.bf16.mxu0 %v2246_v1 }
 0x489   :  { %2044 = vmatpush3.bf16.msra.mxu0 %v2246_v1 }
 0x48a   :  { %2045 = vmatprep.subr.bf16.mxu0 %v2246_v1 }
 0x48d   :  { %2046 = vmatpush3.bf16.msra.mxu0 %v2246_v1 }
 0x48e   :  { %2047 = vmatprep.subr.bf16.mxu0 %v2246_v1 }
 0x491   :  { %2048 = vmatpush3.bf16.msra.mxu0 %v2246_v1 }
 0x492   :  { %2049 = vmatprep.subr.bf16.mxu0 %v2246_v1 }
 0x495   :  { %2050 = vmatpush3.bf16.msra.mxu0 %v2246_v1 }
 0x496   :  { %2051 = vmatprep.subr.bf16.mxu0 %v2246_v1 }
 0x499   :  { %2052 = vmatpush3.bf16.msra.mxu0 %v2246_v1 }
 0x49a   :  { %2053 = vmatprep.subr.bf16.mxu0 %v2246_v1 }
 0x49d   :  { %2054 = vmatpush3.bf16.msra.mxu0 %v2246_v1 }
 0x49e   :  { %2071 = vmatprep.subr.bf16.mxu0 %v2253_v19 }
 0x553   :  { %v1870_v44 = vpop.f32.mrb[8].mxu0 }
 0x554   :  { %v1003_v45 = vadd.f32 %v1870_v44, %v910_v39  ;;  %v997_v49 = vpop.f32.mrb[9].mxu0 }
 0x555   :  { %v998_v56 = vadd.f32 %v997_v49, %v905_v34 }
 0x556   :  { %v1017_v60 = vmax.f32 %v1003_v45, 0.0  ;;  %v1531_v45 = vsel %vm74_vm3, 1.0, %v2255_v20 }
 0x557   :  { %v1016_v57 = vmax.f32 %v998_v56, 0.0  ;;  %v1873_v59 = vpop.f32.mrb[10].mxu0 }
 0x558   :  { %v1013_v62 = vadd.f32 %v1873_v59, %v920_v58  ;;  %v1007_v63 = vpop.f32.mrb[11].mxu0 }
 0x559   :  { %v1008_v0 = vadd.f32 %v1007_v63, %v915_v61  ;;  %1906 = vmatprep.mubr.f32.mxu0 %v1016_v57 }
 0x55a   :  { %1907 = vmatmul.mubr.f32.vlgmr.msra.gmra.mrb[12].mxu0 %v1017_v60  ;;  %v1019_v5 = vmax.f32 %v1013_v62, 0.0 }
 0x55b   :  { %v1018_v4 = vmax.f32 %v1008_v0, 0.0  ;;  %2073 = vmatpush3.bf16.msk.msra.mxu0 %vm2376_vm6, %v2246_v1 }
 0x55c   :  { %2080 = vmatprep.subr.bf16.mxu0 %v2253_v19 }
 0x55d   :  { %1909 = vmatprep.mubr.f32.mxu0 %v1018_v4 }
 0x55e   :  { %1910 = vmatmul.mubr.f32.gmra.mrb[14].mxu0 %v1019_v5 }
 0x55f   :  { %1954 = vmatprep.mubr.msk.f32.mxu0 %vm2254_vm11, %v2255_v20 }
 0x562   :  { %1955 = vmatmul.mubr.msk.f32.vlgmr.msra.gmra.mrb[16].mxu0 %vm235_vm8, %v1258_v21 }
 0x563   :  { %1957 = vmatprep.mubr.msk.f32.mxu0 %vm2254_vm11, %v2255_v20 }
 0x566   :  { %1958 = vmatmul.mubr.msk.f32.gmra.mrb[18].mxu0 %vm235_vm8, %v1259_v22 }
 0x567   :  { %1960 = vmatprep.mubr.msk.f32.mxu0 %vm2254_vm11, %v2255_v20 }
 0x56a   :  { %1961 = vmatmul.mubr.msk.f32.gmra.mrb[20].mxu0 %vm235_vm8, %v1260_v23 }
 0x56b   :  { %1980 = vmatprep.mubr.msk.f32.mxu0 %vm2254_vm11, %v2255_v20 }
 0x62d   :  { %v1908_v8 = vpop.f32.mrb[12].mxu0 }
 0x62e   :  { %v1106_v10 = vmul.f32 0.0078125, %v1908_v8  ;;  %v1086_v11 = vpop.f32.mrb[13].mxu0 }
 0x62f   :  { %v1105_v12 = vmul.f32 0.0078125, %v1086_v11  ;;  %v1353_v11 = vld [vmem:[#allocation7 + $0x78] sm:$0x1] }
 0x630   :  { %1116 = vperm.xlu0 %2121, %v1106_v10  }
 0x631   :  { %1111 = vperm.xlu1 %2122, %v1105_v12   ;;  %v1911_v15 = vpop.f32.mrb[14].mxu0 }
 0x632   :  { %v1096_v16 = vpop.f32.mrb[15].mxu0  ;;  %v1108_v18 = vmul.f32 0.0078125, %v1911_v15 }
 0x633   :  { %v1107_v17 = vmul.f32 0.0078125, %v1096_v16 }
 0x635   :  { %1121 = vperm.xlu1 %2122, %v1107_v17   ;;  %v1336_v40 = vpop.f32.mrb[16].mxu0 }
 0x636   :  { %v1350_v42 = vmul.f32 %v1529_v37, %v1336_v40  ;;  %v1956_v43 = vpop.f32.mrb[17].mxu0 }
 0x639   :  { %1126 = vperm.xlu1 %2122, %v1108_v18   ;;  %v1341_v46 = vpop.f32.mrb[18].mxu0 }
 0x63a   :  { %v1351_v47 = vmul.f32 %v1530_v41, %v1341_v46  ;;  %v1959_v48 = vpop.f32.mrb[19].mxu0 }
 0x63c   :  { %v2081_v50 = vpack.c.bf16 %v1351_v47, %v1350_v42 }
 0x63d   :  { %v1346_v49 = vpop.f32.mrb[20].mxu0 }
 0x63e   :  { %2082 = vmatpush3.bf16.msra.mxu0 %v2081_v50  ;;  %v1962_v58 = vpop.f32.mrb[21].mxu0 }
 0x63f   :  { %1978 = vmatprep.subr.mxu0 %v2255_v20 }
 0x6af   :  { %v1117_v1 = vpop.permute.xlu0 %1116 }
 0x6b0   :  { %v1130_v14 = vsub.f32 %v1017_v60, %v1117_v1  ;;  %v1112_v24 = vpop.permute.xlu1 %1111  ;;  %v1501_v60 = vld [vmem:[#allocation7 + $0x79] sm:$0x1] }
 0x6b1   :  { %v1129_v25 = vsub.f32 %v1016_v57, %v1112_v24  ;;  %v1352_v57 = vmul.f32 %v1531_v45, %v1346_v49 }
 0x6b2   :  { %v1134_v27 = vmul.f32 %v1130_v14, %v1130_v14 }
 0x6b3   :  { %v1133_v26 = vmul.f32 %v1129_v25, %v1129_v25  ;;  %1979 = vmatpush3.msra.mxu0 %v1352_v57 }
 0x6b4   :  { %v1122_v29 = vpop.permute.xlu1 %1121  ;;  %1981 = vmatmul.mubr.msk.f32.vlgmr.msra.gmra.mrb[22].mxu0 %vm113_vm7, %v2248_v13 }
 0x6b5   :  { %v2610_v31 = vsub.f32 %v1018_v4, %v1122_v29  ;;  %1944 = vmatprep.mubr.f32.mxu1 %v1133_v26 }
 0x6b6   :  { %1945 = vmatmul.mubr.f32.vlgmr.msra.gmra.mrb[16].mxu1 %v1134_v27 }
 0x6b7   :  { %v1135_v32 = vmul.f32 %v2610_v31, %v2610_v31 }
 0x6b8   :  { %v1127_v33 = vpop.permute.xlu1 %1126 }
 0x6b9   :  { %v1132_v35 = vsub.f32 %v1019_v5, %v1127_v33  ;;  %1947 = vmatprep.mubr.f32.mxu1 %v1135_v32 }
 0x6bb   :  { %v1136_v36 = vmul.f32 %v1132_v35, %v1132_v35 }
 0x6bd   :  { %1948 = vmatmul.mubr.f32.gmra.mrb[18].mxu1 %v1136_v36 }
 0x6be   :  { %1971 = vmatprep.mubr.msk.f32.mxu1 %vm2254_vm11, %v2255_v20 }
 0x787   :  { %v1497_v13 = vpop.f32.mrb[22].mxu0 }
 0x788   :  { %v1982_v12 = vpop.f32.mrb[23].mxu0 }
 0x789   :  { %v1946_v51 = vpop.f32.mrb[16].mxu1 }
 0x78a   :  { %v1223_v7 = vmul.f32 0.0078125, %v1946_v51  ;;  %v1203_v52 = vpop.f32.mrb[17].mxu1 }
 0x78b   :  { %v1222_v28 = vmul.f32 0.0078125, %v1203_v52 }
 0x78c   :  { %v1227_v30 = vadd.f32 1e-05, %v1223_v7 }
 0x78d   :  { %v1226_v2 = vadd.f32 1e-05, %v1222_v28 }
 0x78e   :  { %2139 = vrsqrt.f32 %v1227_v30 }
 0x78f   :  { %2141 = vrsqrt.f32 %v1226_v2 }
 0x790   :  { %v1949_v53 = vpop.f32.mrb[18].mxu1 }
 0x791   :  { %v1225_v54 = vmul.f32 0.0078125, %v1949_v53  ;;  %v1213_v3 = vpop.f32.mrb[19].mxu1 }
 0x792   :  { %v1224_v55 = vmul.f32 0.0078125, %v1213_v3 }
 0x793   :  { %v1229_v38 = vadd.f32 1e-05, %v1225_v54 }
 0x794   :  { %v1228_v34 = vadd.f32 1e-05, %v1224_v55 }
 0x795   :  { %2143 = vrsqrt.f32 %v1229_v38 }
 0x796   :  { %2145 = vrsqrt.f32 %v1228_v34 }
 0x798   :  { %v2140_v39 = vpop.eup %2139 }
 0x799   :  { %v2142_v44 = vpop.eup %2141  ;;  %1241 = vperm.xlu1 %2122, %v2140_v39  }
 0x79a   :  { %1236 = vperm.xlu0 %2121, %v2142_v44  }
 0x79f   :  { %v2144_v56 = vpop.eup %2143 }
 0x7a0   :  { %v2146_v59 = vpop.eup %2145  ;;  %1251 = vperm.xlu1 %2122, %v2144_v56  }
 0x7a1   :  { %1246 = vperm.xlu0 %2121, %v2146_v59  }
 0x7a5   :  { %1504 = vperm.xlu0 %2121, %v1501_v60  }
 0x818   :  { %v1242_v61 = vpop.permute.xlu1 %1241 }
 0x819   :  { %v1255_v62 = vmul.f32 %v1242_v61, %v1130_v14  ;;  %v1237_v63 = vpop.permute.xlu0 %1236 }
 0x81a   :  { %v1254_v0 = vmul.f32 %v1237_v63, %v1129_v25 }
 0x81c   :  { %v2075_v4 = vpack.c.bf16 %v1255_v62, %v1254_v0 }
 0x81e   :  { %2076 = vmatpush3.bf16.msra.mxu1 %v2075_v4 }
 0x81f   :  { %v1252_v6 = vpop.permute.xlu1 %1251  ;;  %2077 = vmatprep.subr.bf16.mxu1 %v2253_v19 }
 0x820   :  { %v1257_v9 = vmul.f32 %v1252_v6, %v1132_v35  ;;  %v1247_v5 = vpop.permute.xlu0 %1246 }
 0x821   :  { %v1256_v8 = vmul.f32 %v1247_v5, %v2610_v31 }
 0x823   :  { %v2078_v10 = vpack.c.bf16 %v1257_v9, %v1256_v8 }
 0x824   :  { %v1505_v18 = vpop.permute.xlu0 %1504 }
 0x825   :  { %2079 = vmatpush3.bf16.msra.mxu1 %v2078_v10 }
 0x828   :  { %1972 = vmatmul.mubr.msk.f32.vlgmr.msra.gmra.mrb[20].mxu1 %vm1354_vm12, %v1353_v11 }
 0x8fb   :  { %v1424_v15 = vpop.f32.mrb[20].mxu1 }
 0x8fc   :  { %v1498_v16 = vadd.f32 %v1497_v13, %v1424_v15  ;;  %v1973_v17 = vpop.f32.mrb[21].mxu1 }
 0x8fe   :  { %v1507_v20 = vadd.f32 %v1505_v18, %v1498_v16 }
 0x900   :  { %1508 = vst [vmem:[#allocation8] sm:$0x1] %v1507_v20 }
 0x901   :  { %2224 = shalt.err (!%p2221_p0)
}
 0x902   :  { %s2225_s28 = scalar_lea.hbm %s2643_s3, 16 }
 0x903   :  { %p2226_p1 = scmp.ne.s32.totalorder %s2643_s3, %s2225_s28  ;;  %p2229_p2 = scmp.lt.u32.totalorder %s2225_s28, %s2643_s3 }
 0x905   :  { %p2231_p3 = pnand %p2229_p2, %p2226_p1 }
 0x907   :  { %2234 = shalt.err (!%p2231_p3)
}
 0x908   :  { %1518 = dma.vmem_to_hbm [thread:$0]  %s1516_s23, 16, %s2643_s3, [#allocation4]  }
 0x909   :  { %2239 = dma.done.wait [#allocation4], 16  }
 0x90a   :  { %2240 = vsyncadd [#allocation4], 4294967280 }
 0x90b   :  { %1522 = vsyncpa [#allocation3], 1 }
 0x90c   :  { %1523 = vsyncpa [#allocation6], 1 }
 0x90d   :  { %1524 = vsyncpa [#allocation4], 1 }

</bundles_post_ra>
